<compile_context>
chip_gen: v5e
topology: v5e:2x2
jax: 0.10.0
libtpu: 0.0.40
codegen_flags: <defaults>
</compile_context>

<pallas_src>
import functools

import jax
import jax.numpy as jnp
from jax.experimental import pallas as pl
from jax.experimental.pallas import tpu as pltpu

BN_EPS = 1e-5
LANE = 128
MLP_HIDDEN = 64


# ----------------------------------------------------------------------------- helpers

def _round_up(x, m):
    return ((x + m - 1) // m) * m


def _vmem_cap_bytes():
    try:
        return int(pltpu.get_tpu_info().vmem_capacity_bytes)
    except Exception:
        return 128 * 1024 * 1024


def _vmem_limit(need_bytes):
    # Actual (double-buffered) block bytes + headroom, capped below physical VMEM.
    cap = _vmem_cap_bytes()
    return int(min(max(need_bytes + (16 << 20), 32 << 20), int(0.9 * cap)))


def _pick_tiles(n):
    """Row tile TM and contraction tile TK for the aggregation kernel."""
    cap = _vmem_cap_bytes()
    t = 512 if cap >= (96 << 20) else 256      # 512 on 128 MiB parts, 256 on v7x (64 MiB)
    if n <= t:
        n_pad = _round_up(max(n, 8), 8)        # single block == full array dims
        return n_pad, n_pad, n_pad
    n_pad = _round_up(n, t)
    return n_pad, t, t


def _pick_head_tile(n_pad):
    """Larger row tile for the pure HBM-streaming head pass."""
    if n_pad <= 2048:
        return n_pad
    for t in (2048, 1024, 512, 256, 128):
        if n_pad % t == 0:
            return t
    return n_pad


# ----------------------------------------------------------------------------- kernels

def gcn_agg_kernel(*refs, fuse_input_bn_relu):
    """One (row-block, K-block) step of a GCN layer.

    Accumulates A_blk @ R_blk into an f32 scratch; at the last K step applies the layer
    weight + bias, emits hp (bf16) and per-row-block BN partial sums (f32).
    If fuse_input_bn_relu, applies BN+ReLU of the previous layer to each incoming R block.
    """
    if fuse_input_bn_relu:
        (a_ref, r_ref, w_ref, b_ref, scale_ref, shift_ref,
         hp_ref, sum_ref, sq_ref, acc_ref) = refs
    else:
        a_ref, r_ref, w_ref, b_ref, hp_ref, sum_ref, sq_ref, acc_ref = refs
        scale_ref = shift_ref = None

    k = pl.program_id(1)

    @pl.when(k == 0)
    def _():
        acc_ref[...] = jnp.zeros_like(acc_ref)

    r = r_ref[...]
    if fuse_input_bn_relu:
        # BN1 + ReLU on the streamed feature block (VPU work, hidden under the A DMA).
        r = jnp.maximum(r.astype(jnp.float32) * scale_ref[...] + shift_ref[...], 0.0)
        r = r.astype(jnp.bfloat16)

    # Dominant N^2 matmul: bf16 x bf16 -> f32 accumulate on the MXU.
    acc_ref[...] += jnp.dot(a_ref[...], r, preferred_element_type=jnp.float32)

    @pl.when(k == pl.num_programs(1) - 1)
    def _():
        p = acc_ref[...].astype(jnp.bfloat16)            # bf16 MXU path for the small matmul
        hp = jnp.dot(p, w_ref[...], preferred_element_type=jnp.float32) + b_ref[...]
        hp_ref[...] = hp.astype(jnp.bfloat16)
        # BN partials from the f32 result (statistics precision unaffected by the bf16 store).
        # Padded node rows contribute exactly `bias`; corrected analytically in _bn_affine.
        sum_ref[...] = jnp.sum(hp, axis=0, keepdims=True)[None]       # (1, 1, Hp)
        sq_ref[...] = jnp.sum(hp * hp, axis=0, keepdims=True)[None]   # (1, 1, Hp)


def mlp_head_kernel(hp_ref, scale_ref, shift_ref, w3_ref, b3_ref, w4_ref, b4_ref, out_ref):
    """BN2 + ReLU + Linear(H,64) + ReLU + Linear(64,1), fused per row block (lane-padded)."""
    h = jnp.maximum(hp_ref[...].astype(jnp.float32) * scale_ref[...] + shift_ref[...], 0.0)
    m = jnp.dot(h.astype(jnp.bfloat16), w3_ref[...],
                preferred_element_type=jnp.float32) + b3_ref[...]
    m = jnp.maximum(m, 0.0)
    # TODO(synk): Dropout(0.5) (train-mode stochastic mask) has no deterministic equivalent;
    # applied as identity (eval semantics).
    o = jnp.dot(m.astype(jnp.bfloat16), w4_ref[...],
                preferred_element_type=jnp.float32) + b4_ref[...]
    out_ref[...] = o.astype(jnp.bfloat16)


# ----------------------------------------------------------------------------- wrappers

def gcn_agg(a_hat, r, w, b, tm, tk, scale_in=None, shift_in=None):
    n_pad = a_hat.shape[0]
    r_w = r.shape[1]          # feature width of R (lane-padded)
    h_pad = w.shape[1]
    nb = n_pad // tm
    kb = n_pad // tk
    fuse = scale_in is not None

    in_specs = [
        pl.BlockSpec((tm, tk), lambda i, k: (i, k)),     # A_hat block (pipelined)
        pl.BlockSpec((tk, r_w), lambda i, k: (k, 0)),    # R block (pipelined over K)
        pl.BlockSpec((r_w, h_pad), lambda i, k: (0, 0)), # weight (fetched once)
        pl.BlockSpec((1, h_pad), lambda i, k: (0, 0)),   # bias
    ]
    args = [a_hat, r, w, b]
    if fuse:
        in_specs += [pl.BlockSpec((1, r_w), lambda i, k: (0, 0)),
                     pl.BlockSpec((1, r_w), lambda i, k: (0, 0))]
        args += [scale_in, shift_in]

    # VMEM accounting: pipelined blocks x2, tiny residents x2, outputs x2, plus scratch.
    need = (2 * tm * tk * 2
            + 2 * tk * r_w * 2
            + 2 * r_w * h_pad * 2
            + 2 * 3 * h_pad * 4
            + 2 * r_w * 4 * (2 if fuse else 0)
            + 2 * tm * h_pad * 2
            + 2 * 2 * h_pad * 4
            + tm * r_w * 4)

    kernel = functools.partial(gcn_agg_kernel, fuse_input_bn_relu=fuse)
    return pl.pallas_call(
        kernel,
        out_shape=(
            jax.ShapeDtypeStruct((n_pad, h_pad), jnp.bfloat16),
            jax.ShapeDtypeStruct((nb, 1, h_pad), jnp.float32),
            jax.ShapeDtypeStruct((nb, 1, h_pad), jnp.float32),
        ),
        grid=(nb, kb),
        in_specs=in_specs,
        out_specs=(
            pl.BlockSpec((tm, h_pad), lambda i, k: (i, 0)),
            pl.BlockSpec((1, 1, h_pad), lambda i, k: (i, 0, 0)),
            pl.BlockSpec((1, 1, h_pad), lambda i, k: (i, 0, 0)),
        ),
        scratch_shapes=[pltpu.VMEM((tm, r_w), jnp.float32)],
        compiler_params=pltpu.CompilerParams(
            dimension_semantics=("parallel", "arbitrary"),
            vmem_limit_bytes=_vmem_limit(need)),
    )(*args)


def mlp_head(hp, scale, shift, w3, b3, w4, b4, tm):
    n_pad, h_pad = hp.shape
    m_pad = w3.shape[1]
    o_pad = w4.shape[1]
    nb = n_pad // tm
    need = (2 * tm * h_pad * 2 + 2 * tm * o_pad * 2
            + 2 * (h_pad * m_pad * 2 + m_pad * o_pad * 2)
            + 2 * (2 * h_pad + m_pad + o_pad) * 4)
    return pl.pallas_call(
        mlp_head_kernel,
        out_shape=jax.ShapeDtypeStruct((n_pad, o_pad), jnp.bfloat16),
        grid=(nb,),
        in_specs=[
            pl.BlockSpec((tm, h_pad), lambda i: (i, 0)),
            pl.BlockSpec((1, h_pad), lambda i: (0, 0)),
            pl.BlockSpec((1, h_pad), lambda i: (0, 0)),
            pl.BlockSpec((h_pad, m_pad), lambda i: (0, 0)),
            pl.BlockSpec((1, m_pad), lambda i: (0, 0)),
            pl.BlockSpec((m_pad, o_pad), lambda i: (0, 0)),
            pl.BlockSpec((1, o_pad), lambda i: (0, 0)),
        ],
        out_specs=pl.BlockSpec((tm, o_pad), lambda i: (i, 0)),
        compiler_params=pltpu.CompilerParams(
            dimension_semantics=("parallel",),
            vmem_limit_bytes=_vmem_limit(need)),
    )(hp, scale, shift, w3, b3, w4, b4)


# ----------------------------------------------------------------------------- model glue

def build_normalized_adjacency(edge_index, num_nodes, n_pad):
    """Dense bf16 D^-1/2 (A + I) D^-1/2 with A[dst, src] summed per edge (PyG gcn_norm).

    Duplicate edges accumulate (scatter-add) and self-loops are only added where missing,
    matching torch_geometric's add_remaining_self_loops behaviour.
    """
    # TODO(synk): for large sparse graphs replace this O(N^2) densification with a CSR
    # gather aggregation (PrefetchScalarGridSpec + manual DMA) inside the kernel.
    # TODO(synk): on v7x, store A_hat in fp8 (e4m3) to halve the dominant HBM stream;
    # kept bf16 here for portability/accuracy across v5e/v6e.
    src, dst = edge_index[0], edge_index[1]
    adj = jnp.zeros((num_nodes, num_nodes), jnp.float32)
    adj = adj.at[dst, src].add(1.0)
    idx = jnp.arange(num_nodes)
    diag = adj[idx, idx]
    adj = adj.at[idx, idx].add(jnp.where(diag == 0.0, 1.0, 0.0))
    deg = jnp.sum(adj, axis=1)                       # in-degree incl. self-loop
    d_inv_sqrt = jnp.where(deg > 0, jax.lax.rsqrt(deg), 0.0)
    a_norm = adj * d_inv_sqrt[:, None] * d_inv_sqrt[None, :]
    a_norm = jnp.pad(a_norm, ((0, n_pad - num_nodes), (0, n_pad - num_nodes)))
    return a_norm.astype(jnp.bfloat16)


def _bn_affine(sums, sumsqs, gamma, beta, bias, n_real, n_pad):
    """Fold training-mode BatchNorm stats into per-feature scale/shift (tiny XLA reduce).

    Padded node rows produce hp == bias exactly (their A rows are zero), so their
    contribution is removed analytically instead of masking inside the kernel.
    """
    n_fake = n_pad - n_real
    s = jnp.sum(sums, axis=(0, 1)).reshape(1, -1) - n_fake * bias
    q = jnp.sum(sumsqs, axis=(0, 1)).reshape(1, -1) - n_fake * (bias * bias)
    mean = s / n_real
    var = jnp.maximum(q / n_real - mean * mean, 0.0)      # biased variance (training mode)
    scale = gamma * jax.lax.rsqrt(var + BN_EPS)           # (1, Hp)
    shift = beta - mean * scale                           # (1, Hp)
    return scale, shift


def pad_params(params, in_channels, hidden):
    c_pad = _round_up(in_channels, LANE)
    h_pad = _round_up(hidden, LANE)
    m_pad = _round_up(MLP_HIDDEN, LANE)
    o_pad = LANE

    def pad_mat(w, rows, cols):
        w = jnp.pad(w, ((0, rows - w.shape[0]), (0, cols - w.shape[1])))
        return w.astype(jnp.bfloat16)                     # bf16 MXU path for small matmuls

    def pad_row(v, cols):
        v = v.reshape(1, -1)
        return jnp.pad(v, ((0, 0), (0, cols - v.shape[1]))).astype(jnp.float32)

    return {
        "w1": pad_mat(params["w1"], c_pad, h_pad), "b1": pad_row(params["b1"], h_pad),
        "g1": pad_row(params["g1"], h_pad), "be1": pad_row(params["be1"], h_pad),
        "w2": pad_mat(params["w2"], h_pad, h_pad), "b2": pad_row(params["b2"], h_pad),
        "g2": pad_row(params["g2"], h_pad), "be2": pad_row(params["be2"], h_pad),
        "w3": pad_mat(params["w3"], h_pad, m_pad), "b3": pad_row(params["b3"], m_pad),
        "w4": pad_mat(params["w4"], m_pad, o_pad), "b4": pad_row(params["b4"], o_pad),
    }


def gcn_net_forward(x, edge_index, params):
    n, c_in = x.shape
    hidden = params["w1"].shape[1]

    n_pad, tm, tk = _pick_tiles(n)
    c_pad = _round_up(c_in, LANE)

    pp = pad_params(params, c_in, hidden)
    a_hat = build_normalized_adjacency(edge_index, n, n_pad)                     # (Np, Np) bf16
    x_p = jnp.pad(x, ((0, n_pad - n), (0, c_pad - c_in))).astype(jnp.bfloat16)   # (Np, Cp) bf16

    # Layer 1: (A @ X) @ W1 + b1 with K-tiled contraction over nodes; BN1 stats as partials.
    hp1, s1, q1 = gcn_agg(a_hat, x_p, pp["w1"], pp["b1"], tm, tk)
    scale1, shift1 = _bn_affine(s1, q1, pp["g1"], pp["be1"], pp["b1"], n, n_pad)

    # Layer 2: BN1 + ReLU fused onto the streamed feature blocks (no separate elementwise pass).
    hp2, s2, q2 = gcn_agg(a_hat, hp1, pp["w2"], pp["b2"], tm, tk,
                          scale_in=scale1, shift_in=shift1)
    scale2, shift2 = _bn_affine(s2, q2, pp["g2"], pp["be2"], pp["b2"], n, n_pad)

    # BN2 + ReLU + MLP head fused per (large) row block; lane-dense padded bf16 output,
    # real result in column 0, sliced outside.
    tm_head = _pick_head_tile(n_pad)
    out_p = mlp_head(hp2, scale2, shift2, pp["w3"], pp["b3"], pp["w4"], pp["b4"], tm_head)
    return out_p[:n, 0].astype(jnp.float32)               # matches x.squeeze() -> (N,)


def init_params(key, in_channels, hidden_channels):
    ks = jax.random.split(key, 6)

    def glorot(k, shape):
        fan_in, fan_out = shape
        lim = jnp.sqrt(6.0 / (fan_in + fan_out))
        return jax.random.uniform(k, shape, jnp.float32, -lim, lim)

    return {
        "w1": glorot(ks[0], (in_channels, hidden_channels)),
        "b1": jnp.zeros((hidden_channels,), jnp.float32),
        "g1": jnp.ones((hidden_channels,), jnp.float32),
        "be1": jnp.zeros((hidden_channels,), jnp.float32),
        "w2": glorot(ks[1], (hidden_channels, hidden_channels)),
        "b2": jnp.zeros((hidden_channels,), jnp.float32),
        "g2": jnp.ones((hidden_channels,), jnp.float32),
        "be2": jnp.zeros((hidden_channels,), jnp.float32),
        "w3": glorot(ks[2], (hidden_channels, MLP_HIDDEN)),
        "b3": glorot(ks[3], (1, MLP_HIDDEN))[0],
        "w4": glorot(ks[4], (MLP_HIDDEN, 1)),
        "b4": glorot(ks[5], (1, 1))[0],
    }


if __name__ == "__main__":
    N_NODES = 32
    IN_CHANNELS = 16
    HIDDEN = 32
    N_EDGES = 64

    key = jax.random.PRNGKey(0)
    k_x, k_e, k_p = jax.random.split(key, 3)

    x = jax.random.normal(k_x, (N_NODES, IN_CHANNELS), dtype=jnp.float32)
    edge_index = jax.random.randint(k_e, (2, N_EDGES), 0, N_NODES, dtype=jnp.int32)
    params = init_params(k_p, IN_CHANNELS, HIDDEN)

    fwd = jax.jit(gcn_net_forward)
    out = fwd(x, edge_index, params)
    jax.block_until_ready(out)
    assert out.shape == (N_NODES,), out.shape
    print("KERNEL_OK")
</pallas_src>

<mosaic_0001>
module attributes {stable_mosaic.version = 11 : i64} {
  func.func @gcn_agg_kernel(%arg0: i32, %arg1: i32, %arg2: memref<32x32xbf16, #tpu.memory_space<vmem>>, %arg3: memref<32x128xbf16, #tpu.memory_space<vmem>>, %arg4: memref<128x128xbf16, #tpu.memory_space<vmem>>, %arg5: memref<1x128xf32, #tpu.memory_space<vmem>>, %arg6: memref<32x128xbf16, #tpu.memory_space<vmem>>, %arg7: memref<1x1x128xf32, #tpu.memory_space<vmem>>, %arg8: memref<1x1x128xf32, #tpu.memory_space<vmem>>, %arg9: memref<32x128xf32, #tpu.memory_space<vmem>>) attributes {dimension_semantics = [#tpu.dimension_semantics<parallel>, #tpu.dimension_semantics<arbitrary>], iteration_bounds = array<i64: 1, 1>, scalar_prefetch = 0 : i64, scratch_operands = 1 : i64, tpu.core_type = #tpu.core_type<tc>, window_params = [{transform_indices = @transform_0, window_bounds = array<i64: 32, 32>}, {transform_indices = @transform_1, window_bounds = array<i64: 32, 128>}, {pipeline_mode = #tpu.pipeline_mode<synchronous>, transform_indices = @transform_2, window_bounds = array<i64: 128, 128>}, {pipeline_mode = #tpu.pipeline_mode<synchronous>, transform_indices = @transform_3, window_bounds = array<i64: 1, 128>}, {transform_indices = @transform_4, window_bounds = array<i64: 32, 128>}, {transform_indices = @transform_5, window_bounds = array<i64: 1, 1, 128>}, {transform_indices = @transform_6, window_bounds = array<i64: 1, 1, 128>}]} {
    %c0_i32 = arith.constant 0 : i32
    %0 = arith.cmpi eq, %arg1, %c0_i32 : i32
    %1 = arith.extui %0 : i1 to i32
    %c0_i32_0 = arith.constant 0 : i32
    %2 = arith.cmpi ne, %1, %c0_i32_0 : i32
    scf.if %2 {
      %cst_10 = arith.constant 0.000000e+00 : f32
      %12 = vector.broadcast %cst_10 : f32 to vector<32x128xf32>
      %c0_11 = arith.constant 0 : index
      %c0_12 = arith.constant 0 : index
      %13 = vector.load %arg9[%c0_11, %c0_12] : memref<32x128xf32, #tpu.memory_space<vmem>>, vector<32x128xf32>
      tpu.vector_store %arg9[%c0_11, %c0_12], %12 {strides = array<i32>} : memref<32x128xf32, #tpu.memory_space<vmem>>, vector<32x128xf32>,
    } else {
    }
    %c0 = arith.constant 0 : index
    %c0_1 = arith.constant 0 : index
    %3 = vector.load %arg3[%c0, %c0_1] : memref<32x128xbf16, #tpu.memory_space<vmem>>, vector<32x128xbf16>
    %c0_2 = arith.constant 0 : index
    %c0_3 = arith.constant 0 : index
    %4 = vector.load %arg9[%c0_2, %c0_3] : memref<32x128xf32, #tpu.memory_space<vmem>>, vector<32x128xf32>
    %c0_4 = arith.constant 0 : index
    %c0_5 = arith.constant 0 : index
    %5 = vector.load %arg2[%c0_4, %c0_5] : memref<32x32xbf16, #tpu.memory_space<vmem>>, vector<32x32xbf16>
    %cst = arith.constant dense<0.000000e+00> : vector<32x128xf32>
    %6 = tpu.matmul %5, %3, %cst {dimension_numbers = #tpu.dot_dimension_numbers<[1], [0], [0], [1], [0, 0, 1, 1], [], []>} : vector<32x32xbf16>, vector<32x128xbf16>, vector<32x128xf32> -> vector<32x128xf32>
    %7 = arith.addf %4, %6 : vector<32x128xf32>
    %c0_6 = arith.constant 0 : index
    %c0_7 = arith.constant 0 : index
    %8 = vector.load %arg9[%c0_6, %c0_7] : memref<32x128xf32, #tpu.memory_space<vmem>>, vector<32x128xf32>
    tpu.vector_store %arg9[%c0_6, %c0_7], %7 {strides = array<i32>} : memref<32x128xf32, #tpu.memory_space<vmem>>, vector<32x128xf32>,
    %c0_i32_8 = arith.constant 0 : i32
    %9 = arith.cmpi eq, %arg1, %c0_i32_8 : i32
    %10 = arith.extui %9 : i1 to i32
    %c0_i32_9 = arith.constant 0 : i32
    %11 = arith.cmpi ne, %10, %c0_i32_9 : i32
    scf.if %11 {
      %c0_10 = arith.constant 0 : index
      %c0_11 = arith.constant 0 : index
      %12 = vector.load %arg9[%c0_10, %c0_11] : memref<32x128xf32, #tpu.memory_space<vmem>>, vector<32x128xf32>
      %13 = arith.truncf %12 : vector<32x128xf32> to vector<32x128xbf16>
      %c0_12 = arith.constant 0 : index
      %c0_13 = arith.constant 0 : index
      %14 = vector.load %arg4[%c0_12, %c0_13] : memref<128x128xbf16, #tpu.memory_space<vmem>>, vector<128x128xbf16>
      %cst_14 = arith.constant dense<0.000000e+00> : vector<32x128xf32>
      %15 = tpu.matmul %13, %14, %cst_14 {dimension_numbers = #tpu.dot_dimension_numbers<[1], [0], [0], [1], [0, 0, 1, 1], [], []>} : vector<32x128xbf16>, vector<128x128xbf16>, vector<32x128xf32> -> vector<32x128xf32>
      %c0_15 = arith.constant 0 : index
      %c0_16 = arith.constant 0 : index
      %16 = vector.load %arg5[%c0_15, %c0_16] : memref<1x128xf32, #tpu.memory_space<vmem>>, vector<1x128xf32>
      %17 = vector.broadcast %16 : vector<1x128xf32> to vector<32x128xf32>
      %18 = arith.addf %15, %17 : vector<32x128xf32>
      %19 = arith.truncf %18 : vector<32x128xf32> to vector<32x128xbf16>
      %c0_17 = arith.constant 0 : index
      %c0_18 = arith.constant 0 : index
      %20 = vector.load %arg6[%c0_17, %c0_18] : memref<32x128xbf16, #tpu.memory_space<vmem>>, vector<32x128xbf16>
      tpu.vector_store %arg6[%c0_17, %c0_18], %19 {strides = array<i32>} : memref<32x128xbf16, #tpu.memory_space<vmem>>, vector<32x128xbf16>,
      %cst_19 = arith.constant dense<0.000000e+00> : vector<128xf32>
      %21 = vector.multi_reduction <add>, %18, %cst_19 [0] : vector<32x128xf32> to vector<128xf32>
      %22 = vector.shape_cast %21 : vector<128xf32> to vector<1x128xf32>
      %23 = vector.shape_cast %22 : vector<1x128xf32> to vector<1x1x128xf32>
      %c0_20 = arith.constant 0 : index
      %c0_21 = arith.constant 0 : index
      %c0_22 = arith.constant 0 : index
      %24 = vector.load %arg7[%c0_20, %c0_21, %c0_22] : memref<1x1x128xf32, #tpu.memory_space<vmem>>, vector<1x1x128xf32>
      tpu.vector_store %arg7[%c0_20, %c0_21, %c0_22], %23 {strides = array<i32>} : memref<1x1x128xf32, #tpu.memory_space<vmem>>, vector<1x1x128xf32>,
      %25 = arith.mulf %18, %18 : vector<32x128xf32>
      %cst_23 = arith.constant dense<0.000000e+00> : vector<128xf32>
      %26 = vector.multi_reduction <add>, %25, %cst_23 [0] : vector<32x128xf32> to vector<128xf32>
      %27 = vector.shape_cast %26 : vector<128xf32> to vector<1x128xf32>
      %28 = vector.shape_cast %27 : vector<1x128xf32> to vector<1x1x128xf32>
      %c0_24 = arith.constant 0 : index
      %c0_25 = arith.constant 0 : index
      %c0_26 = arith.constant 0 : index
      %29 = vector.load %arg8[%c0_24, %c0_25, %c0_26] : memref<1x1x128xf32, #tpu.memory_space<vmem>>, vector<1x1x128xf32>
      tpu.vector_store %arg8[%c0_24, %c0_25, %c0_26], %28 {strides = array<i32>} : memref<1x1x128xf32, #tpu.memory_space<vmem>>, vector<1x1x128xf32>,
    } else {
    }
    return
  }
  func.func @transform_0(%arg0: i32, %arg1: i32) -> (i32, i32) {
    %c0_i32 = arith.constant 0 : i32
    return %arg0, %arg1 : i32, i32
  }
  func.func @transform_1(%arg0: i32, %arg1: i32) -> (i32, i32) {
    %c0_i32 = arith.constant 0 : i32
    %c0_i32_0 = arith.constant 0 : i32
    return %arg1, %c0_i32 : i32, i32
  }
  func.func @transform_2(%arg0: i32, %arg1: i32) -> (i32, i32) {
    %c0_i32 = arith.constant 0 : i32
    %c0_i32_0 = arith.constant 0 : i32
    %c0_i32_1 = arith.constant 0 : i32
    return %c0_i32, %c0_i32_0 : i32, i32
  }
  func.func @transform_3(%arg0: i32, %arg1: i32) -> (i32, i32) {
    %c0_i32 = arith.constant 0 : i32
    %c0_i32_0 = arith.constant 0 : i32
    %c0_i32_1 = arith.constant 0 : i32
    return %c0_i32, %c0_i32_0 : i32, i32
  }
  func.func @transform_4(%arg0: i32, %arg1: i32) -> (i32, i32) {
    %c0_i32 = arith.constant 0 : i32
    %c0_i32_0 = arith.constant 0 : i32
    return %arg0, %c0_i32 : i32, i32
  }
  func.func @transform_5(%arg0: i32, %arg1: i32) -> (i32, i32, i32) {
    %c0_i32 = arith.constant 0 : i32
    %c0_i32_0 = arith.constant 0 : i32
    %c0_i32_1 = arith.constant 0 : i32
    return %arg0, %c0_i32, %c0_i32_0 : i32, i32, i32
  }
  func.func @transform_6(%arg0: i32, %arg1: i32) -> (i32, i32, i32) {
    %c0_i32 = arith.constant 0 : i32
    %c0_i32_0 = arith.constant 0 : i32
    %c0_i32_1 = arith.constant 0 : i32
    return %arg0, %c0_i32, %c0_i32_0 : i32, i32, i32
  }
}

module attributes {stable_mosaic.version = 11 : i64} {
  func.func @gcn_agg_kernel(%arg0: i32, %arg1: i32, %arg2: memref<32x32xbf16, #tpu.memory_space<vmem>>, %arg3: memref<32x128xbf16, #tpu.memory_space<vmem>>, %arg4: memref<128x128xbf16, #tpu.memory_space<vmem>>, %arg5: memref<1x128xf32, #tpu.memory_space<vmem>>, %arg6: memref<1x128xf32, #tpu.memory_space<vmem>>, %arg7: memref<1x128xf32, #tpu.memory_space<vmem>>, %arg8: memref<32x128xbf16, #tpu.memory_space<vmem>>, %arg9: memref<1x1x128xf32, #tpu.memory_space<vmem>>, %arg10: memref<1x1x128xf32, #tpu.memory_space<vmem>>, %arg11: memref<32x128xf32, #tpu.memory_space<vmem>>) attributes {dimension_semantics = [#tpu.dimension_semantics<parallel>, #tpu.dimension_semantics<arbitrary>], iteration_bounds = array<i64: 1, 1>, scalar_prefetch = 0 : i64, scratch_operands = 1 : i64, tpu.core_type = #tpu.core_type<tc>, window_params = [{transform_indices = @transform_0, window_bounds = array<i64: 32, 32>}, {transform_indices = @transform_1, window_bounds = array<i64: 32, 128>}, {pipeline_mode = #tpu.pipeline_mode<synchronous>, transform_indices = @transform_2, window_bounds = array<i64: 128, 128>}, {pipeline_mode = #tpu.pipeline_mode<synchronous>, transform_indices = @transform_3, window_bounds = array<i64: 1, 128>}, {pipeline_mode = #tpu.pipeline_mode<synchronous>, transform_indices = @transform_4, window_bounds = array<i64: 1, 128>}, {pipeline_mode = #tpu.pipeline_mode<synchronous>, transform_indices = @transform_5, window_bounds = array<i64: 1, 128>}, {transform_indices = @transform_6, window_bounds = array<i64: 32, 128>}, {transform_indices = @transform_7, window_bounds = array<i64: 1, 1, 128>}, {transform_indices = @transform_8, window_bounds = array<i64: 1, 1, 128>}]} {
    %c0_i32 = arith.constant 0 : i32
    %0 = arith.cmpi eq, %arg1, %c0_i32 : i32
    %1 = arith.extui %0 : i1 to i32
    %c0_i32_0 = arith.constant 0 : i32
    %2 = arith.cmpi ne, %1, %c0_i32_0 : i32
    scf.if %2 {
      %cst_15 = arith.constant 0.000000e+00 : f32
      %22 = vector.broadcast %cst_15 : f32 to vector<32x128xf32>
      %c0_16 = arith.constant 0 : index
      %c0_17 = arith.constant 0 : index
      %23 = vector.load %arg11[%c0_16, %c0_17] : memref<32x128xf32, #tpu.memory_space<vmem>>, vector<32x128xf32>
      tpu.vector_store %arg11[%c0_16, %c0_17], %22 {strides = array<i32>} : memref<32x128xf32, #tpu.memory_space<vmem>>, vector<32x128xf32>,
    } else {
    }
    %c0 = arith.constant 0 : index
    %c0_1 = arith.constant 0 : index
    %3 = vector.load %arg3[%c0, %c0_1] : memref<32x128xbf16, #tpu.memory_space<vmem>>, vector<32x128xbf16>
    %4 = arith.extf %3 : vector<32x128xbf16> to vector<32x128xf32>
    %c0_2 = arith.constant 0 : index
    %c0_3 = arith.constant 0 : index
    %5 = vector.load %arg6[%c0_2, %c0_3] : memref<1x128xf32, #tpu.memory_space<vmem>>, vector<1x128xf32>
    %6 = vector.broadcast %5 : vector<1x128xf32> to vector<32x128xf32>
    %7 = arith.mulf %4, %6 : vector<32x128xf32>
    %c0_4 = arith.constant 0 : index
    %c0_5 = arith.constant 0 : index
    %8 = vector.load %arg7[%c0_4, %c0_5] : memref<1x128xf32, #tpu.memory_space<vmem>>, vector<1x128xf32>
    %9 = vector.broadcast %8 : vector<1x128xf32> to vector<32x128xf32>
    %10 = arith.addf %7, %9 : vector<32x128xf32>
    %cst = arith.constant 0.000000e+00 : f32
    %11 = vector.broadcast %cst : f32 to vector<32x128xf32>
    %12 = arith.maximumf %10, %11 : vector<32x128xf32>
    %13 = arith.truncf %12 : vector<32x128xf32> to vector<32x128xbf16>
    %c0_6 = arith.constant 0 : index
    %c0_7 = arith.constant 0 : index
    %14 = vector.load %arg11[%c0_6, %c0_7] : memref<32x128xf32, #tpu.memory_space<vmem>>, vector<32x128xf32>
    %c0_8 = arith.constant 0 : index
    %c0_9 = arith.constant 0 : index
    %15 = vector.load %arg2[%c0_8, %c0_9] : memref<32x32xbf16, #tpu.memory_space<vmem>>, vector<32x32xbf16>
    %cst_10 = arith.constant dense<0.000000e+00> : vector<32x128xf32>
    %16 = tpu.matmul %15, %13, %cst_10 {dimension_numbers = #tpu.dot_dimension_numbers<[1], [0], [0], [1], [0, 0, 1, 1], [], []>} : vector<32x32xbf16>, vector<32x128xbf16>, vector<32x128xf32> -> vector<32x128xf32>
    %17 = arith.addf %14, %16 : vector<32x128xf32>
    %c0_11 = arith.constant 0 : index
    %c0_12 = arith.constant 0 : index
    %18 = vector.load %arg11[%c0_11, %c0_12] : memref<32x128xf32, #tpu.memory_space<vmem>>, vector<32x128xf32>
    tpu.vector_store %arg11[%c0_11, %c0_12], %17 {strides = array<i32>} : memref<32x128xf32, #tpu.memory_space<vmem>>, vector<32x128xf32>,
    %c0_i32_13 = arith.constant 0 : i32
    %19 = arith.cmpi eq, %arg1, %c0_i32_13 : i32
    %20 = arith.extui %19 : i1 to i32
    %c0_i32_14 = arith.constant 0 : i32
    %21 = arith.cmpi ne, %20, %c0_i32_14 : i32
    scf.if %21 {
      %c0_15 = arith.constant 0 : index
      %c0_16 = arith.constant 0 : index
      %22 = vector.load %arg11[%c0_15, %c0_16] : memref<32x128xf32, #tpu.memory_space<vmem>>, vector<32x128xf32>
      %23 = arith.truncf %22 : vector<32x128xf32> to vector<32x128xbf16>
      %c0_17 = arith.constant 0 : index
      %c0_18 = arith.constant 0 : index
      %24 = vector.load %arg4[%c0_17, %c0_18] : memref<128x128xbf16, #tpu.memory_space<vmem>>, vector<128x128xbf16>
      %cst_19 = arith.constant dense<0.000000e+00> : vector<32x128xf32>
      %25 = tpu.matmul %23, %24, %cst_19 {dimension_numbers = #tpu.dot_dimension_numbers<[1], [0], [0], [1], [0, 0, 1, 1], [], []>} : vector<32x128xbf16>, vector<128x128xbf16>, vector<32x128xf32> -> vector<32x128xf32>
      %c0_20 = arith.constant 0 : index
      %c0_21 = arith.constant 0 : index
      %26 = vector.load %arg5[%c0_20, %c0_21] : memref<1x128xf32, #tpu.memory_space<vmem>>, vector<1x128xf32>
      %27 = vector.broadcast %26 : vector<1x128xf32> to vector<32x128xf32>
      %28 = arith.addf %25, %27 : vector<32x128xf32>
      %29 = arith.truncf %28 : vector<32x128xf32> to vector<32x128xbf16>
      %c0_22 = arith.constant 0 : index
      %c0_23 = arith.constant 0 : index
      %30 = vector.load %arg8[%c0_22, %c0_23] : memref<32x128xbf16, #tpu.memory_space<vmem>>, vector<32x128xbf16>
      tpu.vector_store %arg8[%c0_22, %c0_23], %29 {strides = array<i32>} : memref<32x128xbf16, #tpu.memory_space<vmem>>, vector<32x128xbf16>,
      %cst_24 = arith.constant dense<0.000000e+00> : vector<128xf32>
      %31 = vector.multi_reduction <add>, %28, %cst_24 [0] : vector<32x128xf32> to vector<128xf32>
      %32 = vector.shape_cast %31 : vector<128xf32> to vector<1x128xf32>
      %33 = vector.shape_cast %32 : vector<1x128xf32> to vector<1x1x128xf32>
      %c0_25 = arith.constant 0 : index
      %c0_26 = arith.constant 0 : index
      %c0_27 = arith.constant 0 : index
      %34 = vector.load %arg9[%c0_25, %c0_26, %c0_27] : memref<1x1x128xf32, #tpu.memory_space<vmem>>, vector<1x1x128xf32>
      tpu.vector_store %arg9[%c0_25, %c0_26, %c0_27], %33 {strides = array<i32>} : memref<1x1x128xf32, #tpu.memory_space<vmem>>, vector<1x1x128xf32>,
      %35 = arith.mulf %28, %28 : vector<32x128xf32>
      %cst_28 = arith.constant dense<0.000000e+00> : vector<128xf32>
      %36 = vector.multi_reduction <add>, %35, %cst_28 [0] : vector<32x128xf32> to vector<128xf32>
      %37 = vector.shape_cast %36 : vector<128xf32> to vector<1x128xf32>
      %38 = vector.shape_cast %37 : vector<1x128xf32> to vector<1x1x128xf32>
      %c0_29 = arith.constant 0 : index
      %c0_30 = arith.constant 0 : index
      %c0_31 = arith.constant 0 : index
      %39 = vector.load %arg10[%c0_29, %c0_30, %c0_31] : memref<1x1x128xf32, #tpu.memory_space<vmem>>, vector<1x1x128xf32>
      tpu.vector_store %arg10[%c0_29, %c0_30, %c0_31], %38 {strides = array<i32>} : memref<1x1x128xf32, #tpu.memory_space<vmem>>, vector<1x1x128xf32>,
    } else {
    }
    return
  }
  func.func @transform_0(%arg0: i32, %arg1: i32) -> (i32, i32) {
    %c0_i32 = arith.constant 0 : i32
    return %arg0, %arg1 : i32, i32
  }
  func.func @transform_1(%arg0: i32, %arg1: i32) -> (i32, i32) {
    %c0_i32 = arith.constant 0 : i32
    %c0_i32_0 = arith.constant 0 : i32
    return %arg1, %c0_i32 : i32, i32
  }
  func.func @transform_2(%arg0: i32, %arg1: i32) -> (i32, i32) {
    %c0_i32 = arith.constant 0 : i32
    %c0_i32_0 = arith.constant 0 : i32
    %c0_i32_1 = arith.constant 0 : i32
    return %c0_i32, %c0_i32_0 : i32, i32
  }
  func.func @transform_3(%arg0: i32, %arg1: i32) -> (i32, i32) {
    %c0_i32 = arith.constant 0 : i32
    %c0_i32_0 = arith.constant 0 : i32
    %c0_i32_1 = arith.constant 0 : i32
    return %c0_i32, %c0_i32_0 : i32, i32
  }
  func.func @transform_4(%arg0: i32, %arg1: i32) -> (i32, i32) {
    %c0_i32 = arith.constant 0 : i32
    %c0_i32_0 = arith.constant 0 : i32
    %c0_i32_1 = arith.constant 0 : i32
    return %c0_i32, %c0_i32_0 : i32, i32
  }
  func.func @transform_5(%arg0: i32, %arg1: i32) -> (i32, i32) {
    %c0_i32 = arith.constant 0 : i32
    %c0_i32_0 = arith.constant 0 : i32
    %c0_i32_1 = arith.constant 0 : i32
    return %c0_i32, %c0_i32_0 : i32, i32
  }
  func.func @transform_6(%arg0: i32, %arg1: i32) -> (i32, i32) {
    %c0_i32 = arith.constant 0 : i32
    %c0_i32_0 = arith.constant 0 : i32
    return %arg0, %c0_i32 : i32, i32
  }
  func.func @transform_7(%arg0: i32, %arg1: i32) -> (i32, i32, i32) {
    %c0_i32 = arith.constant 0 : i32
    %c0_i32_0 = arith.constant 0 : i32
    %c0_i32_1 = arith.constant 0 : i32
    return %arg0, %c0_i32, %c0_i32_0 : i32, i32, i32
  }
  func.func @transform_8(%arg0: i32, %arg1: i32) -> (i32, i32, i32) {
    %c0_i32 = arith.constant 0 : i32
    %c0_i32_0 = arith.constant 0 : i32
    %c0_i32_1 = arith.constant 0 : i32
    return %arg0, %c0_i32, %c0_i32_0 : i32, i32, i32
  }
}

module attributes {stable_mosaic.version = 11 : i64} {
  func.func @mlp_head_kernel(%arg0: i32, %arg1: memref<32x128xbf16, #tpu.memory_space<vmem>>, %arg2: memref<1x128xf32, #tpu.memory_space<vmem>>, %arg3: memref<1x128xf32, #tpu.memory_space<vmem>>, %arg4: memref<128x128xbf16, #tpu.memory_space<vmem>>, %arg5: memref<1x128xf32, #tpu.memory_space<vmem>>, %arg6: memref<128x128xbf16, #tpu.memory_space<vmem>>, %arg7: memref<1x128xf32, #tpu.memory_space<vmem>>, %arg8: memref<32x128xbf16, #tpu.memory_space<vmem>>) attributes {dimension_semantics = [#tpu.dimension_semantics<parallel>], iteration_bounds = array<i64: 1>, scalar_prefetch = 0 : i64, scratch_operands = 0 : i64, tpu.core_type = #tpu.core_type<tc>, window_params = [{transform_indices = @transform_0, window_bounds = array<i64: 32, 128>}, {pipeline_mode = #tpu.pipeline_mode<synchronous>, transform_indices = @transform_1, window_bounds = array<i64: 1, 128>}, {pipeline_mode = #tpu.pipeline_mode<synchronous>, transform_indices = @transform_2, window_bounds = array<i64: 1, 128>}, {pipeline_mode = #tpu.pipeline_mode<synchronous>, transform_indices = @transform_3, window_bounds = array<i64: 128, 128>}, {pipeline_mode = #tpu.pipeline_mode<synchronous>, transform_indices = @transform_4, window_bounds = array<i64: 1, 128>}, {pipeline_mode = #tpu.pipeline_mode<synchronous>, transform_indices = @transform_5, window_bounds = array<i64: 128, 128>}, {pipeline_mode = #tpu.pipeline_mode<synchronous>, transform_indices = @transform_6, window_bounds = array<i64: 1, 128>}, {transform_indices = @transform_7, window_bounds = array<i64: 32, 128>}]} {
    %c0 = arith.constant 0 : index
    %c0_0 = arith.constant 0 : index
    %0 = vector.load %arg1[%c0, %c0_0] : memref<32x128xbf16, #tpu.memory_space<vmem>>, vector<32x128xbf16>
    %1 = arith.extf %0 : vector<32x128xbf16> to vector<32x128xf32>
    %c0_1 = arith.constant 0 : index
    %c0_2 = arith.constant 0 : index
    %2 = vector.load %arg2[%c0_1, %c0_2] : memref<1x128xf32, #tpu.memory_space<vmem>>, vector<1x128xf32>
    %3 = vector.broadcast %2 : vector<1x128xf32> to vector<32x128xf32>
    %4 = arith.mulf %1, %3 : vector<32x128xf32>
    %c0_3 = arith.constant 0 : index
    %c0_4 = arith.constant 0 : index
    %5 = vector.load %arg3[%c0_3, %c0_4] : memref<1x128xf32, #tpu.memory_space<vmem>>, vector<1x128xf32>
    %6 = vector.broadcast %5 : vector<1x128xf32> to vector<32x128xf32>
    %7 = arith.addf %4, %6 : vector<32x128xf32>
    %cst = arith.constant 0.000000e+00 : f32
    %8 = vector.broadcast %cst : f32 to vector<32x128xf32>
    %9 = arith.maximumf %7, %8 : vector<32x128xf32>
    %10 = arith.truncf %9 : vector<32x128xf32> to vector<32x128xbf16>
    %c0_5 = arith.constant 0 : index
    %c0_6 = arith.constant 0 : index
    %11 = vector.load %arg4[%c0_5, %c0_6] : memref<128x128xbf16, #tpu.memory_space<vmem>>, vector<128x128xbf16>
    %cst_7 = arith.constant dense<0.000000e+00> : vector<32x128xf32>
    %12 = tpu.matmul %10, %11, %cst_7 {dimension_numbers = #tpu.dot_dimension_numbers<[1], [0], [0], [1], [0, 0, 1, 1], [], []>} : vector<32x128xbf16>, vector<128x128xbf16>, vector<32x128xf32> -> vector<32x128xf32>
    %c0_8 = arith.constant 0 : index
    %c0_9 = arith.constant 0 : index
    %13 = vector.load %arg5[%c0_8, %c0_9] : memref<1x128xf32, #tpu.memory_space<vmem>>, vector<1x128xf32>
    %14 = vector.broadcast %13 : vector<1x128xf32> to vector<32x128xf32>
    %15 = arith.addf %12, %14 : vector<32x128xf32>
    %cst_10 = arith.constant 0.000000e+00 : f32
    %16 = vector.broadcast %cst_10 : f32 to vector<32x128xf32>
    %17 = arith.maximumf %15, %16 : vector<32x128xf32>
    %18 = arith.truncf %17 : vector<32x128xf32> to vector<32x128xbf16>
    %c0_11 = arith.constant 0 : index
    %c0_12 = arith.constant 0 : index
    %19 = vector.load %arg6[%c0_11, %c0_12] : memref<128x128xbf16, #tpu.memory_space<vmem>>, vector<128x128xbf16>
    %cst_13 = arith.constant dense<0.000000e+00> : vector<32x128xf32>
    %20 = tpu.matmul %18, %19, %cst_13 {dimension_numbers = #tpu.dot_dimension_numbers<[1], [0], [0], [1], [0, 0, 1, 1], [], []>} : vector<32x128xbf16>, vector<128x128xbf16>, vector<32x128xf32> -> vector<32x128xf32>
    %c0_14 = arith.constant 0 : index
    %c0_15 = arith.constant 0 : index
    %21 = vector.load %arg7[%c0_14, %c0_15] : memref<1x128xf32, #tpu.memory_space<vmem>>, vector<1x128xf32>
    %22 = vector.broadcast %21 : vector<1x128xf32> to vector<32x128xf32>
    %23 = arith.addf %20, %22 : vector<32x128xf32>
    %24 = arith.truncf %23 : vector<32x128xf32> to vector<32x128xbf16>
    %c0_16 = arith.constant 0 : index
    %c0_17 = arith.constant 0 : index
    %25 = vector.load %arg8[%c0_16, %c0_17] : memref<32x128xbf16, #tpu.memory_space<vmem>>, vector<32x128xbf16>
    tpu.vector_store %arg8[%c0_16, %c0_17], %24 {strides = array<i32>} : memref<32x128xbf16, #tpu.memory_space<vmem>>, vector<32x128xbf16>,
    return
  }
  func.func @transform_0(%arg0: i32) -> (i32, i32) {
    %c0_i32 = arith.constant 0 : i32
    %c0_i32_0 = arith.constant 0 : i32
    return %arg0, %c0_i32 : i32, i32
  }
  func.func @transform_1(%arg0: i32) -> (i32, i32) {
    %c0_i32 = arith.constant 0 : i32
    %c0_i32_0 = arith.constant 0 : i32
    %c0_i32_1 = arith.constant 0 : i32
    return %c0_i32, %c0_i32_0 : i32, i32
  }
  func.func @transform_2(%arg0: i32) -> (i32, i32) {
    %c0_i32 = arith.constant 0 : i32
    %c0_i32_0 = arith.constant 0 : i32
    %c0_i32_1 = arith.constant 0 : i32
    return %c0_i32, %c0_i32_0 : i32, i32
  }
  func.func @transform_3(%arg0: i32) -> (i32, i32) {
    %c0_i32 = arith.constant 0 : i32
    %c0_i32_0 = arith.constant 0 : i32
    %c0_i32_1 = arith.constant 0 : i32
    return %c0_i32, %c0_i32_0 : i32, i32
  }
  func.func @transform_4(%arg0: i32) -> (i32, i32) {
    %c0_i32 = arith.constant 0 : i32
    %c0_i32_0 = arith.constant 0 : i32
    %c0_i32_1 = arith.constant 0 : i32
    return %c0_i32, %c0_i32_0 : i32, i32
  }
  func.func @transform_5(%arg0: i32) -> (i32, i32) {
    %c0_i32 = arith.constant 0 : i32
    %c0_i32_0 = arith.constant 0 : i32
    %c0_i32_1 = arith.constant 0 : i32
    return %c0_i32, %c0_i32_0 : i32, i32
  }
  func.func @transform_6(%arg0: i32) -> (i32, i32) {
    %c0_i32 = arith.constant 0 : i32
    %c0_i32_0 = arith.constant 0 : i32
    %c0_i32_1 = arith.constant 0 : i32
    return %c0_i32, %c0_i32_0 : i32, i32
  }
  func.func @transform_7(%arg0: i32) -> (i32, i32) {
    %c0_i32 = arith.constant 0 : i32
    %c0_i32_0 = arith.constant 0 : i32
    return %arg0, %c0_i32 : i32, i32
  }
}

</mosaic_0001>

<bundles_post_ra>
// kernel: gcn_net_forward.3
= control target key start
LH: loop header
LB: loop body
LE: loop exit
PB: predicated region body
PF: predicated region fallthrough
CT: control target
= control target key end

     0   :  { %vm63_vm0 = vcmask 261120   ;;  %s405_s1 = inlined_call_operand.vmem [shape: bf16[32,128], index: 1, kind: input, shape index: {}]   ;;  %s406_s2 = inlined_call_operand.vmem [shape: bf16[128,128], index: 2, kind: input, shape index: {}]   ;;  %s407_s0 = inlined_call_operand.vmem [shape: bf16[32,32], index: 0, kind: input, shape index: {}]   ;;  %s408_s3 = inlined_call_operand.vmem [shape: f32[1,128], index: 3, kind: input, shape index: {}]   ;;  %s409_s4 = inlined_call_operand.vmem [shape: bf16[32,128], index: 4, kind: output, shape index: {0}]   ;;  %s410_s5 = inlined_call_operand.vmem [shape: f32[1,1,128], index: 5, kind: output, shape index: {1}]   ;;  %s411_s6 = inlined_call_operand.vmem [shape: f32[1,1,128], index: 6, kind: output, shape index: {2}]  }
   0x1   :  { %v288_v0 = vld [vmem:[%s405_s1 + $0x8] sm:$0xff]  ;;  %v298_v1 = vld [vmem:[%s406_s2 + $0x38] sm:$0xff]  ;;  %v287_v2 = vld [vmem:[%s405_s1] sm:$0xff] }
   0x2   :  { %76 = vmatpush.bf16.msra.mxu0 %v288_v0  ;;  %174 = vmatpush.bf16.msra.mxu1 %v298_v1  ;;  %v297_v3 = vld [vmem:[%s406_s2 + $0x30] sm:$0xff]  ;;  %v289_v4 = vld [vmem:[%s407_s0] sm:$0xff]  ;;  %v296_v5 = vld [vmem:[%s406_s2 + $0x28] sm:$0xff] }
   0x3   :  { %310 = vmatpush.bf16.msra.mxu2 %v298_v1  ;;  %v295_v6 = vld [vmem:[%s406_s2 + $0x20] sm:$0xff]  ;;  %v294_v7 = vld [vmem:[%s406_s2 + $0x18] sm:$0xff]  ;;  %v290_v8 = vld [vmem:[%s407_s0 + $0x8] sm:$0xff] }
   0x4   :  { %v293_v9 = vld [vmem:[%s406_s2 + $0x10] sm:$0xff]  ;;  %v292_v10 = vld [vmem:[%s406_s2 + $0x8] sm:$0xff]  ;;  %v291_v11 = vld [vmem:[%s406_s2] sm:$0xff] }
   0x5   :  { %v318_v19 = vld [vmem:[%s408_s3] ss:$0 sm:$0xff] }
   0x6   :  { %77 = vmatpush.bf16.msra.mxu0 %v287_v2  ;;  %175 = vmatpush.bf16.msra.mxu1 %v297_v3 }
   0x7   :  { %311 = vmatpush.bf16.msra.mxu2 %v297_v3 }
   0x9   :  { %253 = vmatmul.msk.bf16.vlgmr.msra.gmra.mxu0 %vm63_vm0, %v289_v4 }
   0xa   :  { %176 = vmatpush.bf16.msra.mxu1 %v296_v5 }
   0xb   :  { %312 = vmatpush.bf16.msra.mxu2 %v296_v5 }
   0xe   :  { %177 = vmatpush.bf16.msra.mxu1 %v295_v6 }
   0xf   :  { %313 = vmatpush.bf16.msra.mxu2 %v295_v6 }
  0x12   :  { %178 = vmatpush.bf16.msra.mxu1 %v294_v7 }
  0x13   :  { %314 = vmatpush.bf16.msra.mxu2 %v294_v7 }
  0x16   :  { %179 = vmatpush.bf16.msra.mxu1 %v293_v9 }
  0x17   :  { %315 = vmatpush.bf16.msra.mxu2 %v293_v9 }
  0x19   :  { %254 = vmatmul.msk.bf16.gmra.mxu0 %vm63_vm0, %v290_v8 }
  0x1a   :  { %180 = vmatpush.bf16.msra.mxu1 %v292_v10 }
  0x1b   :  { %316 = vmatpush.bf16.msra.mxu2 %v292_v10 }
  0x1e   :  { %181 = vmatpush.bf16.msra.mxu1 %v291_v11 }
  0x1f   :  { %317 = vmatpush.bf16.msra.mxu2 %v291_v11 }
  0x86   :  { %v79_v12 = vpop.f32.mrf.mxu0 }
  0x8e   :  { %v81_v13 = vpop.f32.mrf.mxu0 }
  0x8f   :  { %v104_v14 = vpack.c.bf16 %v81_v13, %v79_v12 }
  0x91   :  { %182 = vmatmul.bf16.vlgmr.msra.gmra.mxu1 %v104_v14 }
  0x96   :  { %v84_v15 = vpop.f32.mrf.mxu0 }
  0x9e   :  { %v86_v16 = vpop.f32.mrf.mxu0 }
  0x9f   :  { %v105_v17 = vpack.c.bf16 %v86_v16, %v84_v15 }
  0xa1   :  { %187 = vmatmul.bf16.vlgmr.msra.gmra.mxu2 %v105_v17 }
 0x10e   :  { %v183_v18 = vpop.f32.mrf.mxu1 }
 0x10f   :  { %v184_v21 = vadd.f32 %v318_v19, %v183_v18 }
 0x111   :  { %v211_v27 = vmul.f32 %v184_v21, %v184_v21 }
 0x116   :  { %v185_v20 = vpop.f32.mrf.mxu1 }
 0x117   :  { %v186_v22 = vadd.f32 %v318_v19, %v185_v20 }
 0x119   :  { %v302_v23 = vpack.c.bf16 %v186_v22, %v184_v21  ;;  %v212_v26 = vmul.f32 %v186_v22, %v186_v22  ;;  %v201_v28 = vadd.f32 %v186_v22, %v184_v21 }
 0x11b   :  { %303 = vst [vmem:[%s409_s4] sm:$0xff] %v302_v23   ;;  %v215_v31 = vadd.f32 %v212_v26, %v211_v27 }
 0x124   :  { %v188_v24 = vpop.f32.mrf.mxu2 }
 0x125   :  { %v189_v25 = vadd.f32 %v318_v19, %v188_v24 }
 0x127   :  { %v213_v29 = vmul.f32 %v189_v25, %v189_v25  ;;  %v202_v32 = vadd.f32 %v201_v28, %v189_v25 }
 0x129   :  { %v216_v34 = vadd.f32 %v215_v31, %v213_v29 }
 0x12c   :  { %v190_v30 = vpop.f32.mrf.mxu2 }
 0x12d   :  { %v191_v33 = vadd.f32 %v318_v19, %v190_v30 }
 0x12f   :  { %v307_v35 = vpack.c.bf16 %v191_v33, %v189_v25  ;;  %v203_v36 = vadd.f32 %v202_v32, %v191_v33  ;;  %v214_v37 = vmul.f32 %v191_v33, %v191_v33 }
 0x131   :  { %309 = vst [vmem:[%s409_s4 + $0x8] sm:$0xff] %v307_v35   ;;  %v204_v38 = vrot.slane %v203_v36, 4  ;;  %v217_v39 = vadd.f32 %v216_v34, %v214_v37 }
 0x133   :  { %v205_v40 = vadd.f32 %v204_v38, %v203_v36  ;;  %v218_v41 = vrot.slane %v217_v39, 4 }
 0x135   :  { %v206_v42 = vrot.slane %v205_v40, 2  ;;  %v219_v43 = vadd.f32 %v218_v41, %v217_v39 }
 0x137   :  { %v207_v44 = vadd.f32 %v206_v42, %v205_v40  ;;  %v220_v45 = vrot.slane %v219_v43, 2 }
 0x139   :  { %v208_v46 = vrot.slane %v207_v44, 1  ;;  %v221_v47 = vadd.f32 %v220_v45, %v219_v43 }
 0x13b   :  { %v209_v48 = vadd.f32 %v208_v46, %v207_v44  ;;  %v222_v49 = vrot.slane %v221_v47, 1 }
 0x13d   :  { %210 = vst [vmem:[%s410_s5] sm:$0x1] %v209_v48  ;;  %v223_v50 = vadd.f32 %v222_v49, %v221_v47 }
 0x13f   :  { %224 = vst [vmem:[%s411_s6] sm:$0x1] %v223_v50 }

// kernel: gcn_net_forward.4
= control target key start
LH: loop header
LB: loop body
LE: loop exit
PB: predicated region body
PF: predicated region fallthrough
CT: control target
= control target key end

     0   :  { %vm83_vm0 = vcmask 261120   ;;  %s442_s1 = inlined_call_operand.vmem [shape: bf16[32,128], index: 1, kind: input, shape index: {}]   ;;  %s443_s4 = inlined_call_operand.vmem [shape: f32[1,128], index: 4, kind: input, shape index: {}]   ;;  %s444_s5 = inlined_call_operand.vmem [shape: f32[1,128], index: 5, kind: input, shape index: {}]   ;;  %s445_s2 = inlined_call_operand.vmem [shape: bf16[128,128], index: 2, kind: input, shape index: {}]   ;;  %s446_s0 = inlined_call_operand.vmem [shape: bf16[32,32], index: 0, kind: input, shape index: {}]   ;;  %s447_s3 = inlined_call_operand.vmem [shape: f32[1,128], index: 3, kind: input, shape index: {}]   ;;  %s448_s6 = inlined_call_operand.vmem [shape: bf16[32,128], index: 6, kind: output, shape index: {0}]   ;;  %s449_s7 = inlined_call_operand.vmem [shape: f32[1,1,128], index: 7, kind: output, shape index: {1}]   ;;  %s450_s8 = inlined_call_operand.vmem [shape: f32[1,1,128], index: 8, kind: output, shape index: {2}]  }
   0x1   :  { %v327_v0 = vld [vmem:[%s442_s1 + $0x8] sm:$0xff]   ;;  %v337_v1 = vld [vmem:[%s443_s4] ss:$0 sm:$0xff]  ;;  %v308_v8 = vld [vmem:[%s445_s2 + $0x38] sm:$0xff] }
   0x2   :  { %v315_v2 = vunpack.c.l.bf16 %v327_v0  ;;  %v316_v3 = vunpack.c.h.bf16 %v327_v0  ;;  %v338_v4 = vld [vmem:[%s444_s5] ss:$0 sm:$0xff]  ;;  %194 = vmatpush.bf16.msra.mxu1 %v308_v8  ;;  %v307_v13 = vld [vmem:[%s445_s2 + $0x30] sm:$0xff]  ;;  %329 = vmatpush.bf16.msra.mxu2 %v308_v8  ;;  %v306_v22 = vld [vmem:[%s445_s2 + $0x28] sm:$0xff] }
   0x3   :  { %v310_v5 = vld [vmem:[%s442_s1] sm:$0xff]   ;;  %v304_v27 = vld [vmem:[%s445_s2 + $0x18] sm:$0xff]  ;;  %v300_v28 = vld [vmem:[%s446_s0 + $0x8] sm:$0xff] }
   0x4   :  { %v311_v6 = vunpack.c.l.bf16 %v310_v5  ;;  %v312_v7 = vunpack.c.h.bf16 %v310_v5  ;;  %v49_v9 = vmul.f32 %v337_v1, %v315_v2  ;;  %v50_v10 = vmul.f32 %v337_v1, %v316_v3  ;;  %v305_v25 = vld [vmem:[%s445_s2 + $0x20] sm:$0xff]  ;;  %v303_v29 = vld [vmem:[%s445_s2 + $0x10] sm:$0xff]  ;;  %v302_v30 = vld [vmem:[%s445_s2 + $0x8] sm:$0xff] }
   0x5   :  { %v299_v26 = vld [vmem:[%s446_s0] sm:$0xff] }
   0x6   :  { %v47_v11 = vmul.f32 %v337_v1, %v311_v6  ;;  %v48_v12 = vmul.f32 %v337_v1, %v312_v7  ;;  %v57_v14 = vadd.f32 %v338_v4, %v49_v9  ;;  %v58_v15 = vadd.f32 %v338_v4, %v50_v10  ;;  %195 = vmatpush.bf16.msra.mxu1 %v307_v13  ;;  %v301_v31 = vld [vmem:[%s445_s2] sm:$0xff] }
   0x7   :  { %330 = vmatpush.bf16.msra.mxu2 %v307_v13  ;;  %v339_v39 = vld [vmem:[%s447_s3] ss:$0 sm:$0xff] }
   0x8   :  { %v55_v16 = vadd.f32 %v338_v4, %v47_v11  ;;  %v56_v17 = vadd.f32 %v338_v4, %v48_v12  ;;  %v61_v18 = vmax.f32 %v57_v14, 0.0  ;;  %v62_v19 = vmax.f32 %v58_v15, 0.0 }
   0xa   :  { %v59_v20 = vmax.f32 %v55_v16, 0.0  ;;  %v60_v21 = vmax.f32 %v56_v17, 0.0  ;;  %v64_v23 = vpack.c.bf16 %v62_v19, %v61_v18  ;;  %196 = vmatpush.bf16.msra.mxu1 %v306_v22 }
   0xb   :  { %331 = vmatpush.bf16.msra.mxu2 %v306_v22 }
   0xc   :  { %96 = vmatpush.bf16.msra.mxu0 %v64_v23  ;;  %v63_v24 = vpack.c.bf16 %v60_v21, %v59_v20 }
   0xe   :  { %197 = vmatpush.bf16.msra.mxu1 %v305_v25 }
   0xf   :  { %332 = vmatpush.bf16.msra.mxu2 %v305_v25 }
  0x10   :  { %97 = vmatpush.bf16.msra.mxu0 %v63_v24 }
  0x12   :  { %198 = vmatpush.bf16.msra.mxu1 %v304_v27 }
  0x13   :  { %265 = vmatmul.msk.bf16.vlgmr.msra.gmra.mxu0 %vm83_vm0, %v299_v26  ;;  %333 = vmatpush.bf16.msra.mxu2 %v304_v27 }
  0x16   :  { %199 = vmatpush.bf16.msra.mxu1 %v303_v29 }
  0x17   :  { %334 = vmatpush.bf16.msra.mxu2 %v303_v29 }
  0x1a   :  { %200 = vmatpush.bf16.msra.mxu1 %v302_v30 }
  0x1b   :  { %335 = vmatpush.bf16.msra.mxu2 %v302_v30 }
  0x1e   :  { %201 = vmatpush.bf16.msra.mxu1 %v301_v31 }
  0x1f   :  { %336 = vmatpush.bf16.msra.mxu2 %v301_v31 }
  0x23   :  { %266 = vmatmul.msk.bf16.gmra.mxu0 %vm83_vm0, %v300_v28 }
  0x90   :  { %v99_v32 = vpop.f32.mrf.mxu0 }
  0x98   :  { %v101_v33 = vpop.f32.mrf.mxu0 }
  0x99   :  { %v124_v34 = vpack.c.bf16 %v101_v33, %v99_v32 }
  0x9b   :  { %202 = vmatmul.bf16.vlgmr.msra.gmra.mxu1 %v124_v34 }
  0xa0   :  { %v104_v35 = vpop.f32.mrf.mxu0 }
  0xa8   :  { %v106_v36 = vpop.f32.mrf.mxu0 }
  0xa9   :  { %v125_v37 = vpack.c.bf16 %v106_v36, %v104_v35 }
  0xab   :  { %207 = vmatmul.bf16.vlgmr.msra.gmra.mxu2 %v125_v37 }
 0x118   :  { %v203_v38 = vpop.f32.mrf.mxu1 }
 0x119   :  { %v204_v41 = vadd.f32 %v339_v39, %v203_v38 }
 0x11b   :  { %v231_v47 = vmul.f32 %v204_v41, %v204_v41 }
 0x120   :  { %v205_v40 = vpop.f32.mrf.mxu1 }
 0x121   :  { %v206_v42 = vadd.f32 %v339_v39, %v205_v40 }
 0x123   :  { %v320_v43 = vpack.c.bf16 %v206_v42, %v204_v41  ;;  %v232_v46 = vmul.f32 %v206_v42, %v206_v42  ;;  %v221_v48 = vadd.f32 %v206_v42, %v204_v41 }
 0x125   :  { %321 = vst [vmem:[%s448_s6] sm:$0xff] %v320_v43   ;;  %v235_v51 = vadd.f32 %v232_v46, %v231_v47 }
 0x12e   :  { %v208_v44 = vpop.f32.mrf.mxu2 }
 0x12f   :  { %v209_v45 = vadd.f32 %v339_v39, %v208_v44 }
 0x131   :  { %v233_v49 = vmul.f32 %v209_v45, %v209_v45  ;;  %v222_v52 = vadd.f32 %v221_v48, %v209_v45 }
 0x133   :  { %v236_v54 = vadd.f32 %v235_v51, %v233_v49 }
 0x136   :  { %v210_v50 = vpop.f32.mrf.mxu2 }
 0x137   :  { %v211_v53 = vadd.f32 %v339_v39, %v210_v50 }
 0x139   :  { %v325_v55 = vpack.c.bf16 %v211_v53, %v209_v45  ;;  %v223_v56 = vadd.f32 %v222_v52, %v211_v53  ;;  %v234_v57 = vmul.f32 %v211_v53, %v211_v53 }
 0x13b   :  { %328 = vst [vmem:[%s448_s6 + $0x8] sm:$0xff] %v325_v55   ;;  %v224_v58 = vrot.slane %v223_v56, 4  ;;  %v237_v59 = vadd.f32 %v236_v54, %v234_v57 }
 0x13d   :  { %v225_v60 = vadd.f32 %v224_v58, %v223_v56  ;;  %v238_v61 = vrot.slane %v237_v59, 4 }
 0x13f   :  { %v226_v62 = vrot.slane %v225_v60, 2  ;;  %v239_v63 = vadd.f32 %v238_v61, %v237_v59 }
 0x141   :  { %v227_v0 = vadd.f32 %v226_v62, %v225_v60  ;;  %v240_v1 = vrot.slane %v239_v63, 2 }
 0x143   :  { %v228_v2 = vrot.slane %v227_v0, 1  ;;  %v241_v3 = vadd.f32 %v240_v1, %v239_v63 }
 0x145   :  { %v229_v4 = vadd.f32 %v228_v2, %v227_v0  ;;  %v242_v5 = vrot.slane %v241_v3, 1 }
 0x147   :  { %230 = vst [vmem:[%s449_s7] sm:$0x1] %v229_v4  ;;  %v243_v6 = vadd.f32 %v242_v5, %v241_v3 }
 0x149   :  { %244 = vst [vmem:[%s450_s8] sm:$0x1] %v243_v6 }

// kernel: gcn_net_forward.5
= control target key start
LH: loop header
LB: loop body
LE: loop exit
PB: predicated region body
PF: predicated region fallthrough
CT: control target
= control target key end

     0   :  { %s480_s3 = inlined_call_operand.vmem [shape: bf16[128,128], index: 3, kind: input, shape index: {}]   ;;  %s481_s5 = inlined_call_operand.vmem [shape: bf16[128,128], index: 5, kind: input, shape index: {}]   ;;  %s482_s1 = inlined_call_operand.vmem [shape: f32[1,128], index: 1, kind: input, shape index: {}]   ;;  %s483_s2 = inlined_call_operand.vmem [shape: f32[1,128], index: 2, kind: input, shape index: {}]   ;;  %s484_s4 = inlined_call_operand.vmem [shape: f32[1,128], index: 4, kind: input, shape index: {}]   ;;  %s485_s0 = inlined_call_operand.vmem [shape: bf16[32,128], index: 0, kind: input, shape index: {}]   ;;  %s486_s6 = inlined_call_operand.vmem [shape: f32[1,128], index: 6, kind: input, shape index: {}]   ;;  %s487_s7 = inlined_call_operand.vmem [shape: bf16[32,128], index: 7, kind: output, shape index: {}]  }
   0x1   :  { %v319_v0 = vld [vmem:[%s480_s3 + $0x38] sm:$0xff]  ;;  %v318_v1 = vld [vmem:[%s480_s3 + $0x30] sm:$0xff]  ;;  %v317_v3 = vld [vmem:[%s480_s3 + $0x28] sm:$0xff] }
   0x2   :  { %124 = vmatpush.bf16.msra.mxu0 %v319_v0  ;;  %348 = vmatpush.bf16.msra.mxu2 %v319_v0  ;;  %v327_v2 = vld [vmem:[%s481_s5 + $0x38] sm:$0xff]  ;;  %v326_v4 = vld [vmem:[%s481_s5 + $0x30] sm:$0xff]  ;;  %v316_v5 = vld [vmem:[%s480_s3 + $0x20] sm:$0xff] }
   0x3   :  { %217 = vmatpush.bf16.msra.mxu1 %v327_v2  ;;  %356 = vmatpush.bf16.msra.mxu3 %v327_v2  ;;  %v329_v6 = vld [vmem:[%s485_s0] sm:$0xff]   ;;  %v346_v7 = vld [vmem:[%s485_s0 + $0x8] sm:$0xff]   ;;  %v315_v14 = vld [vmem:[%s480_s3 + $0x18] sm:$0xff] }
   0x4   :  { %v325_v8 = vld [vmem:[%s481_s5 + $0x28] sm:$0xff]  ;;  %v330_v9 = vunpack.c.l.bf16 %v329_v6  ;;  %v331_v10 = vunpack.c.h.bf16 %v329_v6  ;;  %v364_v11 = vld [vmem:[%s482_s1] ss:$0 sm:$0xff]  ;;  %v334_v12 = vunpack.c.l.bf16 %v346_v7  ;;  %v335_v13 = vunpack.c.h.bf16 %v346_v7  ;;  %v314_v21 = vld [vmem:[%s480_s3 + $0x10] sm:$0xff] }
   0x5   :  { %v324_v15 = vld [vmem:[%s481_s5 + $0x20] sm:$0xff]  ;;  %v313_v26 = vld [vmem:[%s480_s3 + $0x8] sm:$0xff]  ;;  %v323_v34 = vld [vmem:[%s481_s5 + $0x18] sm:$0xff] }
   0x6   :  { %125 = vmatpush.bf16.msra.mxu0 %v318_v1  ;;  %349 = vmatpush.bf16.msra.mxu2 %v318_v1  ;;  %v38_v16 = vmul.f32 %v364_v11, %v330_v9  ;;  %v39_v17 = vmul.f32 %v364_v11, %v331_v10  ;;  %v365_v18 = vld [vmem:[%s483_s2] ss:$0 sm:$0xff]  ;;  %v40_v19 = vmul.f32 %v364_v11, %v334_v12  ;;  %v322_v35 = vld [vmem:[%s481_s5 + $0x10] sm:$0xff]  ;;  %v321_v36 = vld [vmem:[%s481_s5 + $0x8] sm:$0xff] }
   0x7   :  { %218 = vmatpush.bf16.msra.mxu1 %v326_v4  ;;  %357 = vmatpush.bf16.msra.mxu3 %v326_v4  ;;  %v41_v20 = vmul.f32 %v364_v11, %v335_v13  ;;  %v312_v31 = vld [vmem:[%s480_s3] sm:$0xff] }
   0x8   :  { %v46_v22 = vadd.f32 %v365_v18, %v38_v16  ;;  %v47_v23 = vadd.f32 %v365_v18, %v39_v17  ;;  %v48_v24 = vadd.f32 %v365_v18, %v40_v19  ;;  %v320_v37 = vld [vmem:[%s481_s5] sm:$0xff] }
   0x9   :  { %v49_v25 = vadd.f32 %v365_v18, %v41_v20  ;;  %v366_v39 = vld [vmem:[%s484_s4] ss:$0 sm:$0xff] }
   0xa   :  { %126 = vmatpush.bf16.msra.mxu0 %v317_v3  ;;  %350 = vmatpush.bf16.msra.mxu2 %v317_v3  ;;  %v50_v27 = vmax.f32 %v46_v22, 0.0  ;;  %v51_v28 = vmax.f32 %v47_v23, 0.0  ;;  %v52_v29 = vmax.f32 %v48_v24, 0.0  ;;  %v367_v54 = vld [vmem:[%s486_s6] ss:$0 sm:$0xff] }
   0xb   :  { %219 = vmatpush.bf16.msra.mxu1 %v325_v8  ;;  %358 = vmatpush.bf16.msra.mxu3 %v325_v8  ;;  %v53_v30 = vmax.f32 %v49_v25, 0.0 }
   0xc   :  { %v54_v32 = vpack.c.bf16 %v51_v28, %v50_v27 }
   0xd   :  { %v55_v33 = vpack.c.bf16 %v53_v30, %v52_v29 }
   0xe   :  { %127 = vmatpush.bf16.msra.mxu0 %v316_v5  ;;  %351 = vmatpush.bf16.msra.mxu2 %v316_v5 }
   0xf   :  { %220 = vmatpush.bf16.msra.mxu1 %v324_v15  ;;  %359 = vmatpush.bf16.msra.mxu3 %v324_v15 }
  0x12   :  { %128 = vmatpush.bf16.msra.mxu0 %v315_v14  ;;  %352 = vmatpush.bf16.msra.mxu2 %v315_v14 }
  0x13   :  { %221 = vmatpush.bf16.msra.mxu1 %v323_v34  ;;  %360 = vmatpush.bf16.msra.mxu3 %v323_v34 }
  0x16   :  { %129 = vmatpush.bf16.msra.mxu0 %v314_v21  ;;  %353 = vmatpush.bf16.msra.mxu2 %v314_v21 }
  0x17   :  { %222 = vmatpush.bf16.msra.mxu1 %v322_v35  ;;  %361 = vmatpush.bf16.msra.mxu3 %v322_v35 }
  0x1a   :  { %130 = vmatpush.bf16.msra.mxu0 %v313_v26  ;;  %354 = vmatpush.bf16.msra.mxu2 %v313_v26 }
  0x1b   :  { %223 = vmatpush.bf16.msra.mxu1 %v321_v36  ;;  %362 = vmatpush.bf16.msra.mxu3 %v321_v36 }
  0x1e   :  { %131 = vmatpush.bf16.msra.mxu0 %v312_v31  ;;  %355 = vmatpush.bf16.msra.mxu2 %v312_v31 }
  0x1f   :  { %224 = vmatpush.bf16.msra.mxu1 %v320_v37  ;;  %363 = vmatpush.bf16.msra.mxu3 %v320_v37 }
  0x21   :  { %132 = vmatmul.bf16.vlgmr.msra.gmra.mxu0 %v54_v32  ;;  %137 = vmatmul.bf16.vlgmr.msra.gmra.mxu2 %v55_v33 }
  0x9e   :  { %v133_v38 = vpop.f32.mrf.mxu0 }
  0x9f   :  { %v134_v40 = vadd.f32 %v366_v39, %v133_v38 }
  0xa1   :  { %v143_v43 = vmax.f32 %v134_v40, 0.0 }
  0xa4   :  { %v138_v41 = vpop.f32.mrf.mxu2 }
  0xa5   :  { %v139_v46 = vadd.f32 %v366_v39, %v138_v41 }
  0xa6   :  { %v135_v42 = vpop.f32.mrf.mxu0 }
  0xa7   :  { %v136_v44 = vadd.f32 %v366_v39, %v135_v42  ;;  %v145_v50 = vmax.f32 %v139_v46, 0.0 }
  0xa9   :  { %v144_v45 = vmax.f32 %v136_v44, 0.0 }
  0xab   :  { %v147_v47 = vpack.c.bf16 %v144_v45, %v143_v43 }
  0xac   :  { %v140_v48 = vpop.f32.mrf.mxu2 }
  0xad   :  { %v141_v49 = vadd.f32 %v366_v39, %v140_v48  ;;  %225 = vmatmul.bf16.vlgmr.msra.gmra.mxu1 %v147_v47 }
  0xaf   :  { %v146_v51 = vmax.f32 %v141_v49, 0.0 }
  0xb1   :  { %v148_v52 = vpack.c.bf16 %v146_v51, %v145_v50 }
  0xb3   :  { %230 = vmatmul.bf16.vlgmr.msra.gmra.mxu3 %v148_v52 }
 0x12a   :  { %v226_v53 = vpop.f32.mrf.mxu1 }
 0x12b   :  { %v227_v56 = vadd.f32 %v367_v54, %v226_v53 }
 0x132   :  { %v228_v55 = vpop.f32.mrf.mxu1 }
 0x133   :  { %v229_v57 = vadd.f32 %v367_v54, %v228_v55 }
 0x135   :  { %v339_v58 = vpack.c.bf16 %v229_v57, %v227_v56 }
 0x136   :  { %v231_v59 = vpop.f32.mrf.mxu3 }
 0x137   :  { %340 = vst [vmem:[%s487_s7] sm:$0xff] %v339_v58   ;;  %v232_v61 = vadd.f32 %v367_v54, %v231_v59 }
 0x13e   :  { %v233_v60 = vpop.f32.mrf.mxu3 }
 0x13f   :  { %v234_v62 = vadd.f32 %v367_v54, %v233_v60 }
 0x141   :  { %v344_v63 = vpack.c.bf16 %v234_v62, %v232_v61 }
 0x143   :  { %347 = vst [vmem:[%s487_s7 + $0x8] sm:$0xff] %v344_v63  }

</bundles_post_ra>
